<compile_context>
chip_gen: v7x
topology: tpu7x:2x2x1
jax: 0.10.0
libtpu: 0.0.40
codegen_flags: <defaults>
</compile_context>

<pallas_src>
import jax
import jax.numpy as jnp
from jax.experimental import pallas as pl
from jax.experimental.pallas import tpu as pltpu

IN_FEATURES = 25 * 25   # 625
OUT_FEATURES = 2


def _linear_kernel(x_ref, w_ref, b_ref, o_ref):
    # x_ref: (1, 625) VMEM | w_ref: (2, 625) VMEM | b_ref: (2,) SMEM | o_ref: (2, 1) VMEM
    #
    # VPU path: broadcast the single input row over the 2 weight rows
    # (sublane broadcast), multiply elementwise, then one XLU lane reduction
    # per row. No MXU push/pop for a worst-case (M=1, N=2) matmul shape.
    prod = x_ref[...] * w_ref[...]                       # (2, 625)  VPU
    s = jnp.sum(prod, axis=-1, keepdims=True)            # (2, 1)    XLU lane-reduce

    # Bias lives in SMEM as two f32 scalars; build the (2, 1) bias column with
    # a sublane-iota select — no padded VMEM tile, no extra DMA.
    row = jax.lax.broadcasted_iota(jnp.int32, (OUT_FEATURES, 1), 0)
    bias_col = jnp.where(row == 0, b_ref[0], b_ref[1])   # (2, 1)

    o_ref[...] = (s + bias_col).astype(o_ref.dtype)


def linear_model_forward(x, weight, bias):
    """Pallas equivalent of LinearModel.forward.

    x:      any shape with exactly 625 total elements (e.g. (1, 25, 25));
            like the PyTorch module, this only works for batch_size == 1.
    weight: (2, 625)  -- same layout as torch nn.Linear.weight (NOT transposed).
    bias:   (2,)
    returns (batch_size, 2)
    """
    batch_size = x.shape[0]
    assert x.size == IN_FEATURES, (
        f"LinearModel flattens the whole input to {IN_FEATURES} elements; got {x.shape}")

    # x.view(-1) presented as a single lane-dense row vector (1, 625).
    x_flat = x.reshape(1, IN_FEATURES)

    out = pl.pallas_call(
        _linear_kernel,
        out_shape=jax.ShapeDtypeStruct((OUT_FEATURES, 1), x.dtype),
        in_specs=[
            pl.BlockSpec(memory_space=pltpu.MemorySpace.VMEM),   # x_flat (1, 625)
            pl.BlockSpec(memory_space=pltpu.MemorySpace.VMEM),   # weight (2, 625)
            pl.BlockSpec(memory_space=pltpu.MemorySpace.SMEM),   # bias   (2,)
        ],
        out_specs=pl.BlockSpec(memory_space=pltpu.MemorySpace.VMEM),
    )(x_flat, weight, bias)

    # (2, 1) column -> (batch_size, 2), mirroring `.view(batch_size, -1)`.
    return out.reshape(batch_size, -1)


if __name__ == "__main__":
    key = jax.random.PRNGKey(0)
    kx, kw, kb = jax.random.split(key, 3)

    # Deterministic parameter init mimicking torch nn.Linear default
    # (uniform in [-1/sqrt(fan_in), 1/sqrt(fan_in)]).
    bound = 1.0 / (IN_FEATURES ** 0.5)
    weight = jax.random.uniform(
        kw, (OUT_FEATURES, IN_FEATURES), jnp.float32, minval=-bound, maxval=bound)
    bias = jax.random.uniform(
        kb, (OUT_FEATURES,), jnp.float32, minval=-bound, maxval=bound)

    # Input: batch=1, 25x25 "image" -> exactly 625 elements, as the module requires.
    x = jax.random.normal(kx, (1, 25, 25), jnp.float32)

    y = linear_model_forward(x, weight, bias)
    y = jax.block_until_ready(y)

    # Reference check in plain JAX.
    ref = (x.reshape(-1) @ weight.T + bias).reshape(x.shape[0], -1)
    assert y.shape == (1, OUT_FEATURES), y.shape
    assert jnp.allclose(y, ref, atol=1e-5, rtol=1e-5), (y, ref)

    print("KERNEL_OK")
</pallas_src>

<mosaic_0001>
module attributes {stable_mosaic.version = 11 : i64} {
  func.func @_linear_kernel(%arg0: memref<1x625xf32, #tpu.memory_space<vmem>>, %arg1: memref<2x625xf32, #tpu.memory_space<vmem>>, %arg2: memref<2xf32, #tpu.memory_space<smem>>, %arg3: memref<2x1xf32, #tpu.memory_space<vmem>>) attributes {dimension_semantics = [], scalar_prefetch = 0 : i64, scratch_operands = 0 : i64, tpu.core_type = #tpu.core_type<tc>} {
    %c0 = arith.constant 0 : index
    %c0_0 = arith.constant 0 : index
    %0 = vector.load %arg0[%c0, %c0_0] : memref<1x625xf32, #tpu.memory_space<vmem>>, vector<1x625xf32>
    %c0_1 = arith.constant 0 : index
    %c0_2 = arith.constant 0 : index
    %1 = vector.load %arg1[%c0_1, %c0_2] : memref<2x625xf32, #tpu.memory_space<vmem>>, vector<2x625xf32>
    %2 = vector.broadcast %0 : vector<1x625xf32> to vector<2x625xf32>
    %3 = arith.mulf %2, %1 : vector<2x625xf32>
    %cst = arith.constant dense<0.000000e+00> : vector<2xf32>
    %4 = vector.multi_reduction <add>, %3, %cst [1] : vector<2x625xf32> to vector<2xf32>
    %5 = vector.shape_cast %4 : vector<2xf32> to vector<2x1xf32>
    %6 = tpu.iota {dimensions = array<i32: 0>} : vector<2x1xi32>
    %c0_i32 = arith.constant 0 : i32
    %7 = vector.broadcast %c0_i32 : i32 to vector<2x1xi32>
    %8 = arith.cmpi eq, %6, %7 : vector<2x1xi32>
    %c0_3 = arith.constant 0 : index
    %9 = memref.load %arg2[%c0_3] : memref<2xf32, #tpu.memory_space<smem>>
    %c1 = arith.constant 1 : index
    %10 = memref.load %arg2[%c1] : memref<2xf32, #tpu.memory_space<smem>>
    %11 = vector.broadcast %9 : f32 to vector<2x1xf32>
    %12 = vector.broadcast %10 : f32 to vector<2x1xf32>
    %13 = arith.select %8, %11, %12 : vector<2x1xi1>, vector<2x1xf32>
    %14 = arith.addf %5, %13 : vector<2x1xf32>
    %c0_4 = arith.constant 0 : index
    %c0_5 = arith.constant 0 : index
    %15 = vector.load %arg3[%c0_4, %c0_5] : memref<2x1xf32, #tpu.memory_space<vmem>>, vector<2x1xf32>
    tpu.vector_store %arg3[%c0_4, %c0_5], %14 {strides = array<i32>} : memref<2x1xf32, #tpu.memory_space<vmem>>, vector<2x1xf32>,
    return
  }
}

</mosaic_0001>

<bundles_post_ra>
// kernel: tpu_custom_call.1
= control target key start
LH: loop header
LB: loop body
LE: loop exit
PB: predicated region body
PF: predicated region fallthrough
CT: control target
= control target key end

     0   :  { %8 = vsyncpa [#allocation3], 0  ;;  %s270_s0 = inlined_call_operand.hbm [shape: f32[1,625], index: 0, kind: input, shape index: {}]   ;;  %s271_s1 = inlined_call_operand.hbm [shape: f32[2,625], index: 1, kind: input, shape index: {}]   ;;  %s272_s2 = inlined_call_operand.vmem [shape: f32[2], index: 2, kind: input, shape index: {}]   ;;  %s273_s3 = inlined_call_operand.vmem [shape: f32[2,1], index: 3, kind: output, shape index: {}]  }
   0x1   :  { %9 = vsyncpa [#allocation6], 0 }
   0x2   :  { %10 = vsyncpa [#allocation4], 0  ;;  %s216_s12 = smov [#allocation2]   ;;  %s217_s14 = smov [#allocation5]  }
   0x3   :  { %s17_s13 = sshll.u32 %s216_s12, 4  ;;  %s27_s15 = sshll.u32 %s217_s14, 4  ;;  %s18_s13 = int_to_ptr.vmem [resolvable:$true] %s17_s13  ;;  %s28_s15 = int_to_ptr.vmem [resolvable:$true] %s27_s15 }
   0x4   :  { %s154_s18 = scalar_lea.hbm %s270_s0, 80 }
   0x5   :  { %p155_p0 = scmp.ne.s32.totalorder %s270_s0, %s154_s18  ;;  %p158_p1 = scmp.lt.u32.totalorder %s154_s18, %s270_s0 }
   0x7   :  { %p160_p2 = pnand %p158_p1, %p155_p0 }
   0x9   :  { %163 = shalt.err (!%p160_p2)
}
   0xa   :  { %s164_s23 = scalar_lea.vmem %s18_s13, 80  ;;  %s168_s24 = scalar_lea.vmem %s18_s13, 96 }
   0xb   :  { %p165_p3 = scmp.ne.s32.totalorder %s18_s13, %s164_s23  ;;  %p169_p4 = scmp.lt.s32.totalorder %s18_s13, %s18_s13 }
   0xc   :  { %p170_p5 = scmp.lt.s32.totalorder %s168_s24, %s164_s23 }
   0xe   :  { %p171_p6 = por %p170_p5, %p169_p4 }
  0x10   :  { %p172_p7 = pnand %p171_p6, %p165_p3 }
  0x12   :  { %175 = shalt.err (!%p172_p7)
}
  0x13   :  { %20 = dma.hbm_to_vmem [thread:$0]  %s270_s0, 80, %s18_s13, [#allocation3]  }
  0x14   :  { %s176_s29 = scalar_lea.hbm %s271_s1, 160 }
  0x15   :  { %p177_p8 = scmp.ne.s32.totalorder %s271_s1, %s176_s29  ;;  %p180_p9 = scmp.lt.u32.totalorder %s176_s29, %s271_s1 }
  0x17   :  { %p182_p10 = pnand %p180_p9, %p177_p8 }
  0x19   :  { %185 = shalt.err (!%p182_p10)
}
  0x1a   :  { %s186_s7 = scalar_lea.vmem %s28_s15, 160  ;;  %p191_p12 = scmp.lt.s32.totalorder %s28_s15, %s28_s15 }
  0x1b   :  { %p187_p11 = scmp.ne.s32.totalorder %s28_s15, %s186_s7  ;;  %p192_p13 = scmp.lt.s32.totalorder %s186_s7, %s186_s7 }
  0x1d   :  { %p193_p0 = por %p192_p13, %p191_p12 }
  0x1f   :  { %p194_p1 = pnand %p193_p0, %p187_p11 }
  0x21   :  { %197 = shalt.err (!%p194_p1)
}
  0x22   :  { %30 = dma.hbm_to_vmem [thread:$0]  %s271_s1, 160, %s28_s15, [#allocation6]  }
  0x23   :  { %s37_s11 = sshll.u32 %s272_s2, 4  ;;  %s38_s11 = int_to_ptr.vmem [resolvable:$true] %s37_s11 }
  0x24   :  { %s198_s12 = scalar_lea.vmem %s38_s11, 16  ;;  %p203_p3 = scmp.lt.s32.totalorder %s38_s11, %s38_s11 }
  0x25   :  { %p199_p2 = scmp.ne.s32.totalorder %s38_s11, %s198_s12  ;;  %p204_p4 = scmp.lt.s32.totalorder %s198_s12, %s198_s12 }
  0x27   :  { %p205_p5 = por %p204_p4, %p203_p3 }
  0x29   :  { %p206_p6 = pnand %p205_p5, %p199_p2 }
  0x2b   :  { %209 = shalt.err (!%p206_p6)
}
  0x2c   :  { %s218_s13 = smov [#allocation7]  }
  0x2d   :  { %40 = dma.vmem_to_smem %s38_s11, 16, %s218_s13, [#allocation4]  }
  0x2e   :  { %210 = dma.done.wait [#allocation3], 80  }
  0x2f   :  { %211 = vsyncadd [#allocation3], 4294967216 }
  0x30   :  { %212 = dma.done.wait [#allocation6], 160  }
  0x31   :  { %213 = vsyncadd [#allocation6], 4294967136 }
  0x32   :  { %214 = dma.done.wait [#allocation4], 16  }
  0x33   :  { %215 = vsyncadd [#allocation4], 4294967280 }
  0x34   :  { %50 = sfence }
  0x35   :  { %v55_v0 = vlaneseq  ;;  %v219_v1 = vmov 1983009808   ;;  %v52_v3 = vld [vmem:[#allocation5] sm:$0xff]  ;;  %v51_v5 = vld [vmem:[#allocation2] sm:$0x1f]  ;;  %vm116_vm0 = vcmask 1041408  }
  0x36   :  { %v84_v2 = vunpack.c.l.s4 %v219_v1  ;;  %v82_v6 = vcombine.high %v52_v3, %v52_v3  ;;  %v147_v25 = vld.sshfl [vmem:[#allocation5 + $0x8] sm:$0x3 pattern:$0x76325410]  ;;  %vm124_vm1 = vcmask 918528   ;;  %s132_s1 = sld [smem:[#allocation7]] }
  0x37   :  { %v56_v4 = vshrl.u32 %v55_v0, 7  ;;  %s148_s2 = sld [smem:[#allocation7 + $0x1]]  ;;  %vm138_vm3 = vcmask 1024  }
  0x38   :  { %v85_v7 = vunpack.c.0.s8 %v84_v2 }
  0x39   :  { %v57_v8 = vsub.s32 0, %v56_v4  ;;  %v61_v9 = vsub.s32 1, %v56_v4  ;;  %v65_v10 = vsub.s32 2, %v56_v4  ;;  %v69_v11 = vsub.s32 3, %v56_v4 }
  0x3a   :  { %v73_v12 = vsub.s32 4, %v56_v4  ;;  %v88_v13 = vsub.s32 %v85_v7, %v56_v4  ;;  %vm131_vm2 = vcmp.eq.s32.totalorder %v56_v4, 0 }
  0x3b   :  { %v58_v14 = vrot.slane %v51_v5, %v57_v8  ;;  %v66_v15 = vrot.slane %v51_v5, %v65_v10  ;;  %v62_v16 = vrot.slane %v51_v5, %v61_v9  ;;  %v70_v17 = vrot.slane %v51_v5, %v69_v11 }
  0x3c   :  { %v89_v18 = vrot.slane %v52_v3, %v88_v13  ;;  %v96_v19 = vrot.slane %v82_v6, %v88_v13  ;;  %v74_v20 = vrot.slane %v51_v5, %v73_v12  ;;  %v134_v38 = vstv %s132_s1 }
  0x3d   :  { %v135_v39 = vstv %s148_s2 }
  0x3e   :  { %v97_v21 = vcombine.high %v89_v18, %v89_v18  ;;  %v98_v22 = vcombine.high %v96_v19, %v96_v19  ;;  %v111_v23 = vmul.f32 %v89_v18, %v58_v14  ;;  %v113_v24 = vmul.f32 %v96_v19, %v66_v15 }
  0x3f   :  { %v115_v29 = vmul.f32 %v147_v25, %v74_v20  ;;  %v136_v40 = vsel %vm131_vm2, %v134_v38, %v135_v39 }
  0x40   :  { %v112_v26 = vmul.f32 %v97_v21, %v62_v16  ;;  %v114_v27 = vmul.f32 %v98_v22, %v70_v17  ;;  %v117_v28 = vsel %vm116_vm0, %v111_v23, 0.0  ;;  %v120_v31 = vsel %vm116_vm0, %v113_v24, 0.0 }
  0x41   :  { %v125_v35 = vsel %vm124_vm1, %v115_v29, 0.0 }
  0x42   :  { %v118_v30 = vsel %vm116_vm0, %v112_v26, 0.0  ;;  %v122_v33 = vsel %vm116_vm0, %v114_v27, 0.0 }
  0x43   :  { %v119_v32 = vadd.f32 %v118_v30, %v117_v28 }
  0x45   :  { %v121_v34 = vadd.f32 %v120_v31, %v119_v32 }
  0x47   :  { %v123_v36 = vadd.f32 %v122_v33, %v121_v34 }
  0x49   :  { %v126_v37 = vadd.f32 %v125_v35, %v123_v36 }
  0x4b   :  { %127 = vadd.xlane.f32.xlu0 %v126_v37 }
  0xd8   :  { %v128_v41 = vpop.xlane.xlu0 %127 }
  0xd9   :  { %v137_v42 = vadd.f32 %v136_v40, %v128_v41 }
  0xdb   :  { %139 = vst.msk [vmem:[%s273_s3] sm:$0x3] %vm138_vm3, %v137_v42 }
  0xdc   :  { %144 = vsyncpa [#allocation3], 1 }
  0xdd   :  { %145 = vsyncpa [#allocation6], 1 }
  0xde   :  { %146 = vsyncpa [#allocation4], 1 }

</bundles_post_ra>
